<compile_context>
chip_gen: v7x
topology: tpu7x:2x2x1
jax: 0.10.0
libtpu: 0.0.40
codegen_flags: <defaults>
</compile_context>

<pallas_src>
import jax
import jax.numpy as jnp
from jax.experimental import pallas as pl
from jax.experimental.pallas import tpu as pltpu


OUT_W = 8        # lane width of the HBM output tile
UNC_COL = 4      # uncertainty (pre-exp) lives in lanes [UNC_COL, UNC_COL+3)


def _decoder_kernel(inp_ref, wcomb_ref, bcomb_ref, w2_ref, b2_ref,
                    wfin_ref, bout_ref, out_ref):
    # fused projection + first hidden layer of both heads:
    #   t[:, :G] = h1 (coord head), t[:, G:G+H] = u1 (uncertainty head)
    t = jnp.maximum(
        jnp.dot(inp_ref[...].astype(wcomb_ref.dtype), wcomb_ref[...],
                preferred_element_type=jnp.float32) + bcomb_ref[...],
        0.0)

    # second layer with identity passthrough: t2 = [t | h2]  (exact: t >= 0)
    t2 = jnp.maximum(
        jnp.dot(t.astype(w2_ref.dtype), w2_ref[...],
                preferred_element_type=jnp.float32) + b2_ref[...],
        0.0)

    # fused final head, 8-lane dense output:
    #   lanes 0:3 = h2 @ wc3 + bc3 (coords)
    #   lanes 4:7 = u1 @ wu2 + bu2 (pre-exp uncertainty)
    pre = (jnp.dot(t2.astype(wfin_ref.dtype), wfin_ref[...],
                   preferred_element_type=jnp.float32) + bout_ref[...])

    lane = jax.lax.broadcasted_iota(jnp.int32, pre.shape, dimension=1)
    out_ref[...] = jnp.where(lane >= UNC_COL, jnp.exp(pre), pre).astype(out_ref.dtype)


def pack_params(params, *, use_bf16=False):
    """Fold the torch-style params into 3 fused weight matrices + biases."""
    (wp, bp, wc1, bc1, wc2, bc2, wc3, bc3, wu1, bu1, wu2, bu2) = params
    G = wp.shape[1]
    H = wc2.shape[1]
    DH = G + H            # width of fused first-layer activation t = [h1 | u1]
    D2 = DH + H           # width of passthrough activation t2 = [t | h2]

    # fused first layer of both heads
    w1f = jnp.concatenate([wc1, wu1], axis=1)                       # (G, DH)
    b1f = jnp.concatenate([bc1, bu1], axis=1)                       # (1, DH)

    # fold the projection in (no nonlinearity between projection and layer 1)
    wcomb = wp @ w1f                                                # (Fcomb, DH)
    bcomb = bp @ w1f + b1f                                          # (1, DH)

    # second coord layer + identity passthrough of t
    wc2_ext = jnp.concatenate([wc2, jnp.zeros((H, H), wc2.dtype)], axis=0)     # (DH, H)
    w2big = jnp.concatenate([jnp.eye(DH, dtype=wc2.dtype), wc2_ext], axis=1)   # (DH, D2)
    b2big = jnp.concatenate([jnp.zeros((1, DH), bc2.dtype), bc2], axis=1)      # (1, D2)

    # fused final head into an 8-lane output
    wfin = (jnp.zeros((D2, OUT_W), wc3.dtype)
            .at[DH:D2, 0:3].set(wc3)                     # coords from h2 columns
            .at[G:DH, UNC_COL:UNC_COL + 3].set(wu2))     # uncertainty from u1 columns
    bout = (jnp.zeros((1, OUT_W), bc3.dtype)
            .at[:, 0:3].set(bc3)
            .at[:, UNC_COL:UNC_COL + 3].set(bu2))

    if use_bf16:
        wcomb = wcomb.astype(jnp.bfloat16)
        w2big = w2big.astype(jnp.bfloat16)
        wfin = wfin.astype(jnp.bfloat16)

    return (wcomb, bcomb, w2big, b2big, wfin, bout)


def structure_decoder_pallas(nuc, motif, glob, params, *,
                             row_tile=2048, use_bf16=False):
    """nuc:(B,S,Fn) motif:(B,S,Fm) glob:(B,S,Fg) -> (coords (B,S,3), unc (B,S,3))."""
    B, S, Fn = nuc.shape
    Fm = motif.shape[-1]
    Fg = glob.shape[-1]
    Fc = Fn + Fm + Fg
    N = B * S

    packed = pack_params(params, use_bf16=use_bf16)
    DH = packed[0].shape[1]
    D2 = packed[2].shape[1]

    inp = jnp.concatenate([nuc, motif, glob], axis=-1).reshape(N, Fc)
    if use_bf16:
        inp = inp.astype(jnp.bfloat16)

    # 8-aligned row tile, capped so the 1-D parallel grid keeps >= ~4 steps
    # (>= 2 per TensorCore on v7x, >= 2 for pipelining on v5e/v6e).
    rt = max(8, min(row_tile, ((max(N // 4, 1) + 7) // 8) * 8))
    pad = (-N) % rt
    Np = N + pad
    if pad:
        inp = jnp.pad(inp, ((0, pad), (0, 0)))

    grid = (Np // rt,)

    in_specs = [pl.BlockSpec((rt, Fc), lambda i: (i, 0))]
    in_specs += [pl.BlockSpec(p.shape, lambda i: (0, 0)) for p in packed]
    out_specs = pl.BlockSpec((rt, OUT_W), lambda i: (i, 0))

    # advisory cost estimate for the XLA scheduler (3 fused matmul passes)
    flops = 2 * Np * (Fc * DH + DH * D2 + D2 * OUT_W)
    transcendentals = Np * (OUT_W - UNC_COL)
    in_itemsize = 2 if use_bf16 else 4
    bytes_accessed = (Np * Fc * in_itemsize
                      + sum(int(p.size) * p.dtype.itemsize for p in packed)
                      + Np * OUT_W * 4)
    cost = pl.CostEstimate(flops=int(flops),
                           transcendentals=int(transcendentals),
                           bytes_accessed=int(bytes_accessed))

    out = pl.pallas_call(
        _decoder_kernel,
        out_shape=jax.ShapeDtypeStruct((Np, OUT_W), jnp.float32),
        grid_spec=pltpu.PrefetchScalarGridSpec(
            num_scalar_prefetch=0,
            grid=grid,
            in_specs=in_specs,
            out_specs=out_specs,
        ),
        compiler_params=pltpu.CompilerParams(dimension_semantics=("parallel",)),
        cost_estimate=cost,
    )(inp, *packed)

    coords = out[:N, 0:3].reshape(B, S, 3)
    unc = out[:N, UNC_COL:UNC_COL + 3].reshape(B, S, 3)
    return coords, unc


def init_params(key, nucleotide_features, motif_features, global_features):
    """Synthetic params matching the PyTorch module's shapes.

    Linear weights are stored transposed relative to torch (in_dim, out_dim) so
    everything computes x @ W + b.  Biases are 2D (1, out_dim).
    """
    combined = nucleotide_features + motif_features + global_features
    G = global_features
    H = G // 2
    shapes = [
        (combined, G), (1, G),   # projection
        (G, G), (1, G),          # coord layer 1
        (G, H), (1, H),          # coord layer 2
        (H, 3), (1, 3),          # coord layer 3
        (G, H), (1, H),          # uncertainty layer 1
        (H, 3), (1, 3),          # uncertainty layer 2
    ]
    keys = jax.random.split(key, len(shapes))
    params = tuple(0.1 * jax.random.normal(k, s, dtype=jnp.float32)
                   for k, s in zip(keys, shapes))
    return params


def reference_forward(nuc, motif, glob, params):
    (wp, bp, wc1, bc1, wc2, bc2, wc3, bc3, wu1, bu1, wu2, bu2) = params
    combined = jnp.concatenate([nuc, motif, glob], axis=-1)
    x = combined @ wp + bp
    h = jnp.maximum(x @ wc1 + bc1, 0.0)
    h = jnp.maximum(h @ wc2 + bc2, 0.0)
    coords = h @ wc3 + bc3
    u = jnp.maximum(x @ wu1 + bu1, 0.0)
    unc = jnp.exp(u @ wu2 + bu2)
    return coords, unc


if __name__ == "__main__":
    # Small config: nucleotide_features=32, motif_features=16, global_features=32
    B, S = 2, 8
    FN, FM, FG = 32, 16, 32

    key = jax.random.PRNGKey(0)
    k_n, k_m, k_g, k_p = jax.random.split(key, 4)
    nuc = jax.random.normal(k_n, (B, S, FN), dtype=jnp.float32)
    motif = jax.random.normal(k_m, (B, S, FM), dtype=jnp.float32)
    glob = jax.random.normal(k_g, (B, S, FG), dtype=jnp.float32)

    params = init_params(k_p, FN, FM, FG)

    coords, unc = structure_decoder_pallas(nuc, motif, glob, params)
    jax.block_until_ready((coords, unc))

    # sanity check against pure-JAX reference
    ref_coords, ref_unc = reference_forward(nuc, motif, glob, params)
    assert coords.shape == (B, S, 3) and unc.shape == (B, S, 3)
    assert jnp.allclose(coords, ref_coords, atol=1e-4, rtol=1e-4)
    assert jnp.allclose(unc, ref_unc, atol=1e-4, rtol=1e-4)

    print("KERNEL_OK")
</pallas_src>

<mosaic_0001>
module attributes {stable_mosaic.version = 11 : i64} {
  func.func @_decoder_kernel(%arg0: i32, %arg1: memref<8x80xf32, #tpu.memory_space<vmem>>, %arg2: memref<80x48xf32, #tpu.memory_space<vmem>>, %arg3: memref<1x48xf32, #tpu.memory_space<vmem>>, %arg4: memref<48x64xf32, #tpu.memory_space<vmem>>, %arg5: memref<1x64xf32, #tpu.memory_space<vmem>>, %arg6: memref<64x8xf32, #tpu.memory_space<vmem>>, %arg7: memref<1x8xf32, #tpu.memory_space<vmem>>, %arg8: memref<8x8xf32, #tpu.memory_space<vmem>>) attributes {dimension_semantics = [#tpu.dimension_semantics<parallel>], iteration_bounds = array<i64: 2>, scalar_prefetch = 0 : i64, scratch_operands = 0 : i64, tpu.core_type = #tpu.core_type<tc>, window_params = [{transform_indices = @transform_0, window_bounds = array<i64: 8, 80>}, {pipeline_mode = #tpu.pipeline_mode<synchronous>, transform_indices = @transform_1, window_bounds = array<i64: 80, 48>}, {pipeline_mode = #tpu.pipeline_mode<synchronous>, transform_indices = @transform_2, window_bounds = array<i64: 1, 48>}, {pipeline_mode = #tpu.pipeline_mode<synchronous>, transform_indices = @transform_3, window_bounds = array<i64: 48, 64>}, {pipeline_mode = #tpu.pipeline_mode<synchronous>, transform_indices = @transform_4, window_bounds = array<i64: 1, 64>}, {pipeline_mode = #tpu.pipeline_mode<synchronous>, transform_indices = @transform_5, window_bounds = array<i64: 64, 8>}, {pipeline_mode = #tpu.pipeline_mode<synchronous>, transform_indices = @transform_6, window_bounds = array<i64: 1, 8>}, {transform_indices = @transform_7, window_bounds = array<i64: 8, 8>}]} {
    %c0 = arith.constant 0 : index
    %c0_0 = arith.constant 0 : index
    %0 = vector.load %arg1[%c0, %c0_0] : memref<8x80xf32, #tpu.memory_space<vmem>>, vector<8x80xf32>
    %c0_1 = arith.constant 0 : index
    %c0_2 = arith.constant 0 : index
    %1 = vector.load %arg2[%c0_1, %c0_2] : memref<80x48xf32, #tpu.memory_space<vmem>>, vector<80x48xf32>
    %cst = arith.constant dense<0.000000e+00> : vector<8x48xf32>
    %2 = tpu.matmul %0, %1, %cst {dimension_numbers = #tpu.dot_dimension_numbers<[1], [0], [0], [1], [0, 0, 1, 1], [], []>} : vector<8x80xf32>, vector<80x48xf32>, vector<8x48xf32> -> vector<8x48xf32>
    %c0_3 = arith.constant 0 : index
    %c0_4 = arith.constant 0 : index
    %3 = vector.load %arg3[%c0_3, %c0_4] : memref<1x48xf32, #tpu.memory_space<vmem>>, vector<1x48xf32>
    %4 = vector.broadcast %3 : vector<1x48xf32> to vector<8x48xf32>
    %5 = arith.addf %2, %4 : vector<8x48xf32>
    %cst_5 = arith.constant 0.000000e+00 : f32
    %6 = vector.broadcast %cst_5 : f32 to vector<8x48xf32>
    %7 = arith.maximumf %5, %6 : vector<8x48xf32>
    %c0_6 = arith.constant 0 : index
    %c0_7 = arith.constant 0 : index
    %8 = vector.load %arg4[%c0_6, %c0_7] : memref<48x64xf32, #tpu.memory_space<vmem>>, vector<48x64xf32>
    %cst_8 = arith.constant dense<0.000000e+00> : vector<8x64xf32>
    %9 = tpu.matmul %7, %8, %cst_8 {dimension_numbers = #tpu.dot_dimension_numbers<[1], [0], [0], [1], [0, 0, 1, 1], [], []>} : vector<8x48xf32>, vector<48x64xf32>, vector<8x64xf32> -> vector<8x64xf32>
    %c0_9 = arith.constant 0 : index
    %c0_10 = arith.constant 0 : index
    %10 = vector.load %arg5[%c0_9, %c0_10] : memref<1x64xf32, #tpu.memory_space<vmem>>, vector<1x64xf32>
    %11 = vector.broadcast %10 : vector<1x64xf32> to vector<8x64xf32>
    %12 = arith.addf %9, %11 : vector<8x64xf32>
    %cst_11 = arith.constant 0.000000e+00 : f32
    %13 = vector.broadcast %cst_11 : f32 to vector<8x64xf32>
    %14 = arith.maximumf %12, %13 : vector<8x64xf32>
    %c0_12 = arith.constant 0 : index
    %c0_13 = arith.constant 0 : index
    %15 = vector.load %arg6[%c0_12, %c0_13] : memref<64x8xf32, #tpu.memory_space<vmem>>, vector<64x8xf32>
    %cst_14 = arith.constant dense<0.000000e+00> : vector<8x8xf32>
    %16 = tpu.matmul %14, %15, %cst_14 {dimension_numbers = #tpu.dot_dimension_numbers<[1], [0], [0], [1], [0, 0, 1, 1], [], []>} : vector<8x64xf32>, vector<64x8xf32>, vector<8x8xf32> -> vector<8x8xf32>
    %c0_15 = arith.constant 0 : index
    %c0_16 = arith.constant 0 : index
    %17 = vector.load %arg7[%c0_15, %c0_16] : memref<1x8xf32, #tpu.memory_space<vmem>>, vector<1x8xf32>
    %18 = vector.broadcast %17 : vector<1x8xf32> to vector<8x8xf32>
    %19 = arith.addf %16, %18 : vector<8x8xf32>
    %20 = tpu.iota {dimensions = array<i32: 1>} : vector<8x8xi32>
    %c4_i32 = arith.constant 4 : i32
    %21 = vector.broadcast %c4_i32 : i32 to vector<8x8xi32>
    %22 = arith.cmpi sge, %20, %21 : vector<8x8xi32>
    %23 = math.exp %19 : vector<8x8xf32>
    %24 = arith.select %22, %23, %19 : vector<8x8xi1>, vector<8x8xf32>
    %c0_17 = arith.constant 0 : index
    %c0_18 = arith.constant 0 : index
    %25 = vector.load %arg8[%c0_17, %c0_18] : memref<8x8xf32, #tpu.memory_space<vmem>>, vector<8x8xf32>
    tpu.vector_store %arg8[%c0_17, %c0_18], %24 {strides = array<i32>} : memref<8x8xf32, #tpu.memory_space<vmem>>, vector<8x8xf32>,
    return
  }
  func.func @transform_0(%arg0: i32) -> (i32, i32) {
    %c0_i32 = arith.constant 0 : i32
    %c0_i32_0 = arith.constant 0 : i32
    return %arg0, %c0_i32 : i32, i32
  }
  func.func @transform_1(%arg0: i32) -> (i32, i32) {
    %c0_i32 = arith.constant 0 : i32
    %c0_i32_0 = arith.constant 0 : i32
    %c0_i32_1 = arith.constant 0 : i32
    return %c0_i32, %c0_i32_0 : i32, i32
  }
  func.func @transform_2(%arg0: i32) -> (i32, i32) {
    %c0_i32 = arith.constant 0 : i32
    %c0_i32_0 = arith.constant 0 : i32
    %c0_i32_1 = arith.constant 0 : i32
    return %c0_i32, %c0_i32_0 : i32, i32
  }
  func.func @transform_3(%arg0: i32) -> (i32, i32) {
    %c0_i32 = arith.constant 0 : i32
    %c0_i32_0 = arith.constant 0 : i32
    %c0_i32_1 = arith.constant 0 : i32
    return %c0_i32, %c0_i32_0 : i32, i32
  }
  func.func @transform_4(%arg0: i32) -> (i32, i32) {
    %c0_i32 = arith.constant 0 : i32
    %c0_i32_0 = arith.constant 0 : i32
    %c0_i32_1 = arith.constant 0 : i32
    return %c0_i32, %c0_i32_0 : i32, i32
  }
  func.func @transform_5(%arg0: i32) -> (i32, i32) {
    %c0_i32 = arith.constant 0 : i32
    %c0_i32_0 = arith.constant 0 : i32
    %c0_i32_1 = arith.constant 0 : i32
    return %c0_i32, %c0_i32_0 : i32, i32
  }
  func.func @transform_6(%arg0: i32) -> (i32, i32) {
    %c0_i32 = arith.constant 0 : i32
    %c0_i32_0 = arith.constant 0 : i32
    %c0_i32_1 = arith.constant 0 : i32
    return %c0_i32, %c0_i32_0 : i32, i32
  }
  func.func @transform_7(%arg0: i32) -> (i32, i32) {
    %c0_i32 = arith.constant 0 : i32
    %c0_i32_0 = arith.constant 0 : i32
    return %arg0, %c0_i32 : i32, i32
  }
}

</mosaic_0001>

<bundles_post_ra>
// kernel: tpu_custom_call.1
= control target key start
LH: loop header
LB: loop body
LE: loop exit
PB: predicated region body
PF: predicated region fallthrough
CT: control target
= control target key end

     0   :  { %s804_s24 = smov 0   ;;  %s928_s0 = inlined_call_operand.vmem [shape: f32[16,80], index: 0, kind: input, shape index: {}]   ;;  %s929_s1 = inlined_call_operand.vmem [shape: f32[80,48], index: 1, kind: input, shape index: {}]   ;;  %s930_s2 = inlined_call_operand.vmem [shape: f32[1,48], index: 2, kind: input, shape index: {}]   ;;  %s931_s3 = inlined_call_operand.vmem [shape: f32[48,64], index: 3, kind: input, shape index: {}]   ;;  %s932_s4 = inlined_call_operand.vmem [shape: f32[1,64], index: 4, kind: input, shape index: {}]   ;;  %s933_s5 = inlined_call_operand.vmem [shape: f32[64,8], index: 5, kind: input, shape index: {}]   ;;  %s934_s6 = inlined_call_operand.vmem [shape: f32[1,8], index: 6, kind: input, shape index: {}]   ;;  %s935_s7 = inlined_call_operand.vmem [shape: f32[16,8], index: 7, kind: output, shape index: {}]  }
   0x1 LB: > { %s605_s25 = sadd.s32 4294967295, %s759_s24   ;;  %p609_p0 = scmp.ge.s32.totalorder %s759_s24, 1  ;;  %s759_s24 = sphi %s804_s24, %s17_s24  }
   0x2   : > { %p236_p1 = scmp.lt.s32.totalorder %s759_s24, 3 }
   0x4   : > { %p237_p2 = pnand %p609_p0, %p236_p1 }
   0x5   : > { %v275_v0 = vld [vmem:[%s929_s1] sm:$0xff] (!%p237_p2)  ;;  %v276_v1 = vld [vmem:[%s929_s1 + $0x8] sm:$0xff] (!%p237_p2)  ;;  %v277_v2 = vld [vmem:[%s929_s1 + $0x10] sm:$0xff] (!%p237_p2)  ;;  %v761_v3 = vmov (!%p237_p2), 0.0|0.0   ;;  %vm762_vm0 = vmmov (!%p237_p2), 0   ;;  %v763_v6 = vmov (!%p237_p2), 0.0   ;;  %v544_v54 = vlaneseq (!%p237_p2) }
   0x6   : > { %240 = sbr.rel (%p237_p2) target bundleno = 688 (0x2b0), region = 48  ;;  %704 = vmatprep.subr.bf16.mxu0 (!%p237_p2), %v761_v3  ;;  %v705_v4 = vpack.c.bf16 (!%p237_p2), %v276_v1, %v275_v0  ;;  %v278_v5 = vld [vmem:[%s929_s1 + $0x18] sm:$0xff] (!%p237_p2)  ;;  %667 = vmatprep.mubr.msk.f32.mxu0 (!%p237_p2), %vm762_vm0, %v763_v6  ;;  %v279_v8 = vld [vmem:[%s929_s1 + $0x20] sm:$0xff] (!%p237_p2)  ;;  %v368_v10 = vld [vmem:[%s931_s3 + $0x8] sm:$0xff] (!%p237_p2)  ;;  %p266_p3 = scmp.lt.s32.totalorder (!%p237_p2), %s605_s25, 1  ;;  %vm292_vm1 = vcmask (!%p237_p2), 654336  }
   0x7   : > { %719 = vmatprep.subr.bf16.mxu1 (!%p237_p2), %v761_v3  ;;  %682 = vmatprep.mubr.msk.f32.mxu1 (!%p237_p2), %vm762_vm0, %v763_v6  ;;  %v708_v7 = vpack.c.bf16 (!%p237_p2), %v278_v5, %v277_v2  ;;  %v367_v9 = vld [vmem:[%s931_s3] sm:$0xff] (!%p237_p2)  ;;  %v280_v11 = vld [vmem:[%s929_s1 + $0x28] sm:$0xff] (!%p237_p2)  ;;  %v369_v13 = vld [vmem:[%s931_s3 + $0x10] sm:$0xff] (!%p237_p2)  ;;  %vm380_vm2 = vcmask (!%p237_p2), 392192   ;;  %vm470_vm3 = vcmask (!%p237_p2), 523264   ;;  %v545_v55 = vand.u32 (!%p237_p2), 127, %v544_v54 }
   0x8   : > { %706 = vmatpush3.bf16.msra.mxu0 (!%p237_p2), %v705_v4  ;;  %v720_v12 = vpack.c.bf16 (!%p237_p2), %v368_v10, %v367_v9  ;;  %v370_v14 = vld [vmem:[%s931_s3 + $0x18] sm:$0xff] (!%p237_p2)  ;;  %v711_v16 = vpack.c.bf16 (!%p237_p2), %v280_v11, %v279_v8  ;;  %v281_v17 = vld [vmem:[%s929_s1 + $0x30] sm:$0xff] (!%p237_p2)  ;;  %v283_v20 = vld [vmem:[%s929_s1 + $0x40] sm:$0xff] (!%p237_p2)  ;;  %vm550_vm5 = vcmask (!%p237_p2), 64512  }
   0x9   : > { %707 = vmatprep.subr.bf16.mxu0 (!%p237_p2), %v761_v3  ;;  %v723_v15 = vpack.c.bf16 (!%p237_p2), %v370_v14, %v369_v13  ;;  %v282_v18 = vld [vmem:[%s929_s1 + $0x38] sm:$0xff] (!%p237_p2)  ;;  %v284_v21 = vld [vmem:[%s929_s1 + $0x48] sm:$0xff] (!%p237_p2)  ;;  %v371_v24 = vld [vmem:[%s931_s3 + $0x20] sm:$0xff] (!%p237_p2)  ;;  %vm546_vm4 = vcmp.ge.s32.totalorder (!%p237_p2), %v545_v55, 4 }
   0xa   : > { %721 = vmatpush3.bf16.msra.mxu1 (!%p237_p2), %v720_v12  ;;  %v714_v19 = vpack.c.bf16 (!%p237_p2), %v282_v18, %v281_v17  ;;  %v717_v22 = vpack.c.bf16 (!%p237_p2), %v284_v21, %v283_v20  ;;  %v372_v25 = vld [vmem:[%s931_s3 + $0x28] sm:$0xff] (!%p237_p2)  ;;  %v612_v27 = vld [vmem:[%s930_s2] ss:$0 sm:$0xff] (!%p237_p2)  ;;  %v457_v35 = vld [vmem:[%s933_s5 + $0x10] sm:$0xff] (!%p237_p2) }
   0xb   : > { %722 = vmatprep.subr.bf16.mxu1 (!%p237_p2), %v761_v3  ;;  %v726_v26 = vpack.c.bf16 (!%p237_p2), %v372_v25, %v371_v24  ;;  %v455_v28 = vld [vmem:[%s933_s5] sm:$0xff] (!%p237_p2)  ;;  %v456_v29 = vld [vmem:[%s933_s5 + $0x8] sm:$0xff] (!%p237_p2)  ;;  %v458_v36 = vld [vmem:[%s933_s5 + $0x18] sm:$0xff] (!%p237_p2) }
   0xc   : > { %709 = vmatpush3.bf16.msra.mxu0 (!%p237_p2), %v708_v7  ;;  %v729_v33 = vpack.c.bf16 (!%p237_p2), %v456_v29, %v455_v28  ;;  %v732_v37 = vpack.c.bf16 (!%p237_p2), %v458_v36, %v457_v35  ;;  %v459_v38 = vld [vmem:[%s933_s5 + $0x20] sm:$0xff] (!%p237_p2)  ;;  %v460_v39 = vld [vmem:[%s933_s5 + $0x28] sm:$0xff] (!%p237_p2)  ;;  %v461_v41 = vld [vmem:[%s933_s5 + $0x30] sm:$0xff] (!%p237_p2) }
   0xd   : > { %710 = vmatprep.subr.bf16.mxu0 %v761_v3  ;;  %s937_s25 = smov (!%p266_p3, %s605_s25), 1  ;;  %v735_v40 = vpack.c.bf16 %v460_v39, %v459_v38  ;;  %v462_v42 = vld [vmem:[%s933_s5 + $0x38] sm:$0xff]  ;;  %v614_v44 = vld [vmem:[%s932_s4] ss:$0 sm:$0xff] }
   0xe   : > { %724 = vmatpush3.bf16.msra.mxu1 %v723_v15  ;;  %s610_s10 = sshll.u32 %s937_s25, 3  ;;  %v738_v43 = vpack.c.bf16 %v462_v42, %v461_v41  ;;  %v616_v49 = vld [vmem:[%s934_s6] ss:$0 sm:$0xff] }
   0xf   : > { %725 = vmatprep.subr.bf16.mxu1 %v761_v3  ;;  %s269_s13 = scalar_lea.vmem %s928_s0, %s610_s10  ;;  %s273_s22 = scalar_lea.vmem %s935_s7, %s610_s10 }
  0x10   : > { %712 = vmatpush3.bf16.msra.mxu0 %v711_v16  ;;  %v274_v23 = vld [vmem:[%s269_s13] sm:$0xff] }
  0x11   : > { %713 = vmatprep.subr.bf16.mxu0 %v761_v3 }
  0x12   : > { %727 = vmatpush3.bf16.msra.mxu1 %v726_v26 }
  0x13   : > { %728 = vmatprep.subr.bf16.mxu1 %v761_v3 }
  0x14   : > { %715 = vmatpush3.bf16.msra.mxu0 %v714_v19 }
  0x15   : > { %716 = vmatprep.subr.bf16.mxu0 %v761_v3 }
  0x18   : > { %718 = vmatpush3.bf16.msra.mxu0 %v717_v22 }
  0x1b   : > { %668 = vmatmul.mubr.msk.f32.vlgmr.msra.gmra.mrb[0].mxu0 %vm292_vm1, %v274_v23 }
  0xee   : > { %v362_v30 = vpop.f32.mrb[0].mxu0 }
  0xef   : > { %v363_v31 = vadd.f32 %v612_v27, %v362_v30  ;;  %v669_v32 = vpop.f32.mrb[1].mxu0 }
  0xf1   : > { %v366_v34 = vmax.f32 %v363_v31, 0.0 }
  0xf3   : > { %683 = vmatmul.mubr.msk.f32.vlgmr.msra.gmra.mrb[0].mxu1 %vm380_vm2, %v366_v34 }
  0xf4   : > { %730 = vmatpush3.bf16.msra.mxu1 %v729_v33  ;;  %701 = vmatprep.mubr.msk.f32.mxu1 %vm762_vm0, %v763_v6 }
  0xf5   : > { %731 = vmatprep.subr.bf16.mxu1 %v761_v3 }
  0xf8   : > { %733 = vmatpush3.bf16.msra.mxu1 %v732_v37 }
  0xf9   : > { %734 = vmatprep.subr.bf16.mxu1 %v761_v3 }
  0xfc   : > { %736 = vmatpush3.bf16.msra.mxu1 %v735_v40 }
  0xfd   : > { %737 = vmatprep.subr.bf16.mxu1 %v761_v3 }
 0x100   : > { %739 = vmatpush3.bf16.msra.mxu1 %v738_v43 }
 0x1c6   : > { %v450_v45 = vpop.f32.mrb[0].mxu1 }
 0x1c7   : > { %v451_v46 = vadd.f32 %v614_v44, %v450_v45  ;;  %v684_v47 = vpop.f32.mrb[1].mxu1 }
 0x1c9   : > { %v454_v48 = vmax.f32 %v451_v46, 0.0 }
 0x1cb   : > { %702 = vmatmul.mubr.msk.f32.vlgmr.msra.gmra.mrb[2].mxu1 %vm470_vm3, %v454_v48 }
 0x29e   : > { %v540_v50 = vpop.f32.mrb[2].mxu1 }
 0x29f   : > { %v541_v51 = vadd.f32 %v616_v49, %v540_v50  ;;  %v703_v52 = vpop.f32.mrb[3].mxu1 }
 0x2a1   : > { %v547_v53 = vmul.f32 1.442695, %v541_v51 }
 0x2a3   : > { %751 = vpow2.f32 %v547_v53 }
 0x2ad   : > { %v752_v56 = vpop.eup %751 }
 0x2ae   : > { %v549_v57 = vsel %vm546_vm4, %v752_v56, %v541_v51 }
 0x2af   : > { %551 = vst.msk [vmem:[%s273_s22] sm:$0xff] %vm550_vm5, %v549_v57 }
 0x2b0 PF: > { %s17_s24 = sadd.s32 1, %s759_s24  }
 0x2b1   : > { %p14_p4 = scmp.ge.s32.totalorder %s17_s24, 4  }
 0x2b3   :  { %16 = sbr.rel (!%p14_p4) target bundleno = 1 (0x1), region = 78 }

</bundles_post_ra>
